<compile_context>
chip_gen: v6e
topology: v6e:2x2x1
jax: 0.10.0
libtpu: 0.0.40
codegen_flags: <defaults>
</compile_context>

<pallas_src>
import math

import jax
import jax.numpy as jnp
from jax.experimental import pallas as pl
from jax.experimental.pallas import tpu as pltpu

_VMEM_BLOCK_BUDGET = 12 * 1024 * 1024   # 2x double-buffered blocks stay under this
_SMALL_ROWS = 1024                      # grid-less single-block cutoff (rows)


def _decay_diag_kernel(d_ref, w_ref, b_ref, o_ref):
    # gamma = exp(-relu(d * diag(W) + b)); pure VPU/EUP, no MXU, no mask DMA.
    z = d_ref[...].astype(jnp.float32) * w_ref[...].astype(jnp.float32)
    z = z + b_ref[...].astype(jnp.float32)
    o_ref[...] = jnp.exp(-jnp.maximum(z, 0.0)).astype(o_ref.dtype)


def _decay_dense_kernel(d_ref, w_ref, b_ref, o_ref):
    # d @ W.T without an explicit transpose: contract dim 1 of d with dim 1 of
    # W so the MXU consumes the transposed operand directly (no XLU vxpose).
    z = jax.lax.dot_general(
        d_ref[...], w_ref[...],
        dimension_numbers=(((1,), (1,)), ((), ())),
        preferred_element_type=jnp.float32)
    z = z + b_ref[...].astype(jnp.float32)
    o_ref[...] = jnp.exp(-jnp.maximum(z, 0.0)).astype(o_ref.dtype)


def _pallas_elementwise_rows(d2, w2, b2, *, block_rows, cost):
    """Row-tiled launch of the elementwise diag kernel on 2-D operands."""
    rows, width = d2.shape
    out_shape = jax.ShapeDtypeStruct((rows, width), d2.dtype)

    if rows <= min(block_rows, _SMALL_ROWS):
        # Small problem: one full-array block, no grid / pipeline overhead.
        return pl.pallas_call(
            _decay_diag_kernel, out_shape=out_shape, cost_estimate=cost,
        )(d2, w2, b2)

    blk = min(block_rows, rows)
    blk = max(8, (blk // 8) * 8)
    grid = (pl.cdiv(rows, blk),)
    return pl.pallas_call(
        _decay_diag_kernel,
        out_shape=out_shape,
        grid=grid,
        in_specs=[
            pl.BlockSpec((blk, width), lambda i: (i, 0)),
            pl.BlockSpec((1, width), lambda i: (0, 0)),   # diag(W): resident
            pl.BlockSpec((1, width), lambda i: (0, 0)),   # bias   : resident
        ],
        out_specs=pl.BlockSpec((blk, width), lambda i: (i, 0)),
        compiler_params=pltpu.CompilerParams(
            dimension_semantics=("parallel",),
        ),
        cost_estimate=cost,
    )(d2, w2, b2)


def _temporal_decay_diag(d, W, b, *, block_batch):
    B, Din = d.shape
    itemsize = jnp.dtype(d.dtype).itemsize
    w_diag = jnp.diagonal(W)                      # (Din,)  -- W * eye, kept rows only

    # Lane-dense packing: fold `pack` batch rows into one row so the last dim
    # is a multiple of 128 lanes (full vst instead of masked vst.msk).
    pack = 1
    if Din % 128 != 0:
        cand = 128 // math.gcd(Din, 128)
        if cand > 0 and B % cand == 0:
            pack = cand
    width = pack * Din
    rows = B // pack

    d2 = d.reshape(rows, width)                   # zero-copy view of contiguous rows
    w2 = jnp.tile(w_diag, pack).reshape(1, width)
    b2 = jnp.tile(b, pack).reshape(1, width)

    # Clamp the block so double-buffered (in + out) blocks fit the VMEM budget.
    max_rows = max(8, _VMEM_BLOCK_BUDGET // (4 * width * itemsize))
    block_rows = min(max(1, block_batch // pack), max_rows)

    cost = pl.CostEstimate(
        flops=2 * B * Din,
        transcendentals=B * Din,
        bytes_accessed=2 * B * Din * itemsize + 2 * width * 4,
    )
    out2 = _pallas_elementwise_rows(d2, w2, b2, block_rows=block_rows, cost=cost)
    return out2.reshape(B, Din)


def _temporal_decay_dense(d, W, b, *, block_batch):
    B, Din = d.shape
    Dout = W.shape[0]
    itemsize = jnp.dtype(d.dtype).itemsize
    b2 = b.reshape(1, Dout)

    cost = pl.CostEstimate(
        flops=2 * B * Din * Dout,
        transcendentals=B * Dout,
        bytes_accessed=itemsize * B * (Din + Dout) + 4 * (Dout * Din + Dout),
    )
    out_shape = jax.ShapeDtypeStruct((B, Dout), d.dtype)

    # Clamp the block so double-buffered (d + out) blocks fit the VMEM budget.
    max_rows = max(8, _VMEM_BLOCK_BUDGET // (2 * (Din + Dout) * itemsize))
    blk = min(block_batch, max_rows)

    if B <= min(blk, _SMALL_ROWS):
        return pl.pallas_call(
            _decay_dense_kernel, out_shape=out_shape, cost_estimate=cost,
        )(d, W, b2)

    blk = min(blk, B)
    blk = max(8, (blk // 8) * 8)
    grid = (pl.cdiv(B, blk),)
    return pl.pallas_call(
        _decay_dense_kernel,
        out_shape=out_shape,
        grid=grid,
        in_specs=[
            pl.BlockSpec((blk, Din), lambda i: (i, 0)),
            pl.BlockSpec((Dout, Din), lambda i: (0, 0)),   # W resident
            pl.BlockSpec((1, Dout), lambda i: (0, 0)),     # b resident
        ],
        out_specs=pl.BlockSpec((blk, Dout), lambda i: (i, 0)),
        compiler_params=pltpu.CompilerParams(
            dimension_semantics=("parallel",),
        ),
        cost_estimate=cost,
    )(d, W, b2)


def temporal_decay(d, W, b, *, diag=False, block_batch=8192):
    """TemporalDecay forward.  d: (B, Din), W: (Dout, Din), b: (Dout,)."""
    B, Din = d.shape
    Dout, Din_w = W.shape
    assert Din == Din_w
    if diag:
        assert Din == Dout, "diag=True requires input_size == output_size"
        return _temporal_decay_diag(d, W, b, block_batch=block_batch)
    return _temporal_decay_dense(d, W, b, block_batch=block_batch)


def _ref_temporal_decay(d, W, b, diag):
    Wm = W * jnp.eye(W.shape[0], dtype=W.dtype) if diag else W
    return jnp.exp(-jax.nn.relu(d @ Wm.T + b))


if __name__ == "__main__":
    key = jax.random.PRNGKey(0)
    k_d, k_w1, k_b1, k_w2, k_b2, k_dl, k_do = jax.random.split(key, 7)

    batch, input_size, output_size = 8, 32, 32

    # Deterministic parameter init mirroring reset_parameters():
    # uniform(-stdv, stdv) with stdv = 1/sqrt(output_size) (= W.size(0)).
    stdv = 1.0 / math.sqrt(output_size)
    W = jax.random.uniform(k_w1, (output_size, input_size), minval=-stdv,
                           maxval=stdv, dtype=jnp.float32)
    b = jax.random.uniform(k_b1, (output_size,), minval=-stdv, maxval=stdv,
                           dtype=jnp.float32)
    d = jax.random.normal(k_d, (batch, input_size), dtype=jnp.float32)

    # --- diag=True, tiny batch -> lane-dense packed, grid-less elementwise ---
    out_diag = jax.block_until_ready(temporal_decay(d, W, b, diag=True))
    ref_diag = _ref_temporal_decay(d, W, b, diag=True)
    assert out_diag.shape == (batch, output_size)
    assert jnp.allclose(out_diag, ref_diag, atol=1e-5, rtol=1e-5)

    # --- diag=True, batch not divisible by the lane-pack factor (fallback) ---
    d_odd = jax.random.normal(k_do, (10, input_size), dtype=jnp.float32)
    out_odd = jax.block_until_ready(temporal_decay(d_odd, W, b, diag=True))
    assert jnp.allclose(out_odd, _ref_temporal_decay(d_odd, W, b, diag=True),
                        atol=1e-5, rtol=1e-5)

    # --- diag=False, rectangular weight, tiny batch -> grid-less MXU path ---
    out2 = 64
    stdv2 = 1.0 / math.sqrt(out2)
    W2 = jax.random.uniform(k_w2, (out2, input_size), minval=-stdv2,
                            maxval=stdv2, dtype=jnp.float32)
    b2 = jax.random.uniform(k_b2, (out2,), minval=-stdv2, maxval=stdv2,
                            dtype=jnp.float32)
    out_nd = jax.block_until_ready(temporal_decay(d, W2, b2, diag=False))
    assert out_nd.shape == (batch, out2)
    assert jnp.allclose(out_nd, _ref_temporal_decay(d, W2, b2, diag=False),
                        atol=1e-5, rtol=1e-5)

    # --- non-divisible larger batch -> exercises both batch-tiled grid paths
    #     (partial trailing block; Pallas masks the out-of-bounds writeback) ---
    big_batch = 1000
    d_big = jax.random.normal(k_dl, (big_batch, input_size), dtype=jnp.float32)
    out_big_diag = jax.block_until_ready(
        temporal_decay(d_big, W, b, diag=True, block_batch=512))
    assert out_big_diag.shape == (big_batch, output_size)
    assert jnp.allclose(out_big_diag,
                        _ref_temporal_decay(d_big, W, b, diag=True),
                        atol=1e-5, rtol=1e-5)
    out_big_dense = jax.block_until_ready(
        temporal_decay(d_big, W2, b2, diag=False, block_batch=256))
    assert out_big_dense.shape == (big_batch, out2)
    assert jnp.allclose(out_big_dense,
                        _ref_temporal_decay(d_big, W2, b2, diag=False),
                        atol=1e-5, rtol=1e-5)

    print("KERNEL_OK")
</pallas_src>

<mosaic_0001>
module attributes {stable_mosaic.version = 11 : i64} {
  func.func @_decay_diag_kernel(%arg0: memref<2x128xf32, #tpu.memory_space<vmem>>, %arg1: memref<1x128xf32, #tpu.memory_space<vmem>>, %arg2: memref<1x128xf32, #tpu.memory_space<vmem>>, %arg3: memref<2x128xf32, #tpu.memory_space<vmem>>) attributes {dimension_semantics = [], scalar_prefetch = 0 : i64, scratch_operands = 0 : i64, tpu.core_type = #tpu.core_type<tc>} {
    %c0 = arith.constant 0 : index
    %c0_0 = arith.constant 0 : index
    %0 = vector.load %arg0[%c0, %c0_0] : memref<2x128xf32, #tpu.memory_space<vmem>>, vector<2x128xf32>
    %c0_1 = arith.constant 0 : index
    %c0_2 = arith.constant 0 : index
    %1 = vector.load %arg1[%c0_1, %c0_2] : memref<1x128xf32, #tpu.memory_space<vmem>>, vector<1x128xf32>
    %2 = vector.broadcast %1 : vector<1x128xf32> to vector<2x128xf32>
    %3 = arith.mulf %0, %2 : vector<2x128xf32>
    %c0_3 = arith.constant 0 : index
    %c0_4 = arith.constant 0 : index
    %4 = vector.load %arg2[%c0_3, %c0_4] : memref<1x128xf32, #tpu.memory_space<vmem>>, vector<1x128xf32>
    %5 = vector.broadcast %4 : vector<1x128xf32> to vector<2x128xf32>
    %6 = arith.addf %3, %5 : vector<2x128xf32>
    %cst = arith.constant 0.000000e+00 : f32
    %7 = vector.broadcast %cst : f32 to vector<2x128xf32>
    %8 = arith.maximumf %6, %7 : vector<2x128xf32>
    %cst_5 = arith.constant 0.000000e+00 : f32
    %9 = vector.broadcast %cst_5 : f32 to vector<2x128xf32>
    %10 = arith.subf %9, %8 : vector<2x128xf32>
    %11 = math.exp %10 : vector<2x128xf32>
    %c0_6 = arith.constant 0 : index
    %c0_7 = arith.constant 0 : index
    %12 = vector.load %arg3[%c0_6, %c0_7] : memref<2x128xf32, #tpu.memory_space<vmem>>, vector<2x128xf32>
    tpu.vector_store %arg3[%c0_6, %c0_7], %11 {strides = array<i32>} : memref<2x128xf32, #tpu.memory_space<vmem>>, vector<2x128xf32>,
    return
  }
}

</mosaic_0001>

<bundles_post_ra>
// kernel: tpu_custom_call.1
= control target key start
LH: loop header
LB: loop body
LE: loop exit
PB: predicated region body
PF: predicated region fallthrough
CT: control target
= control target key end

     0   :  { %8 = vsyncpa [#allocation3], 0  ;;  %s148_s0 = inlined_call_operand.hbm [shape: f32[2,128], index: 0, kind: input, shape index: {}]   ;;  %s149_s1 = inlined_call_operand.vmem [shape: f32[1,128], index: 1, kind: input, shape index: {}]   ;;  %s150_s2 = inlined_call_operand.vmem [shape: f32[1,128], index: 2, kind: input, shape index: {}]   ;;  %s151_s3 = inlined_call_operand.hbm [shape: f32[2,128], index: 3, kind: output, shape index: {}]  }
   0x1   :  { %9 = vsyncpa [#allocation4], 0  ;;  %s114_s12 = smov [#allocation2]  }
   0x2   :  { %s16_s13 = sshll.u32 %s114_s12, 4  ;;  %s17_s13 = int_to_ptr.vmem [resolvable:$true] %s16_s13 }
   0x3   :  { %s78_s14 = scalar_lea.vmem %s17_s13, 32  ;;  %p83_p1 = scmp.lt.s32.totalorder %s17_s13, %s17_s13 }
   0x4   :  { %p79_p0 = scmp.ne.s32.totalorder %s17_s13, %s78_s14  ;;  %p84_p2 = scmp.lt.s32.totalorder %s78_s14, %s78_s14 }
   0x6   :  { %p85_p3 = por %p84_p2, %p83_p1 }
   0x8   :  { %p86_p4 = pnand %p85_p3, %p79_p0 }
   0xa   :  { %89 = shalt.err (!%p86_p4)
}
   0xb   :  { %19 = dma.hbm_to_vmem [thread:$0]  %s148_s0, 32, %s17_s13, [#allocation3]  }
   0xc   :  { %110 = dma.done.wait [#allocation3], 32  }
   0xd   :  { %111 = vsyncadd [#allocation3], 4294967264  ;;  %v27_v0 = vld [vmem:[#allocation2] sm:$0x3]  ;;  %s115_s21 = smov [#allocation5]  }
   0xe   :  { %v64_v1 = vld [vmem:[%s149_s1] ss:$0 sm:$0xff]  ;;  %s55_s22 = sshll.u32 %s115_s21, 4  ;;  %s56_s22 = int_to_ptr.vmem [resolvable:$true] %s55_s22 }
   0xf   :  { %v65_v2 = vld [vmem:[%s150_s2] ss:$0 sm:$0xff]  ;;  %v35_v3 = vmul.f32 %v64_v1, %v27_v0  ;;  %s90_s0 = scalar_lea.vmem %s56_s22, 32  ;;  %p95_p6 = scmp.lt.s32.totalorder %s56_s22, %s56_s22 }
  0x10   :  { %p91_p5 = scmp.ne.s32.totalorder %s56_s22, %s90_s0  ;;  %p96_p7 = scmp.lt.s32.totalorder %s90_s0, %s90_s0 }
  0x11   :  { %v43_v4 = vadd.f32 %v65_v2, %v35_v3 }
  0x12   :  { %p97_p8 = por %p96_p7, %p95_p6 }
  0x13   :  { %v44_v5 = vmax.f32 %v43_v4, 0.0 }
  0x14   :  { %p98_p9 = pnand %p97_p8, %p91_p5 }
  0x15   :  { %v45_v6 = vsub.f32 0.0, %v44_v5 }
  0x17   :  { %v46_v7 = vmul.f32 1.442695, %v45_v6 }
  0x19   :  { %68 = vpow2.f32 %v46_v7 }
  0x26   :  { %v69_v8 = vpop.eup %68 }
  0x27   :  { %48 = vst [vmem:[#allocation5] sm:$0x3] %v69_v8 }
  0x28   :  { %101 = shalt.err (!%p98_p9)
}
  0x29   :  { %58 = dma.vmem_to_hbm [thread:$0]  %s56_s22, 32, %s151_s3, [#allocation4]  }
  0x2a   :  { %112 = dma.done.wait [#allocation4], 32  }
  0x2b   :  { %113 = vsyncadd [#allocation4], 4294967264 }
  0x2c   :  { %62 = vsyncpa [#allocation3], 1 }
  0x2d   :  { %63 = vsyncpa [#allocation4], 1 }

</bundles_post_ra>
